<compile_context>
chip_gen: v5e
topology: v5e:2x2
jax: 0.10.0
libtpu: 0.0.40
codegen_flags: <defaults>
</compile_context>

<pallas_src>
import jax
import jax.numpy as jnp
import numpy as np
from jax.experimental import pallas as pl
from jax.experimental.pallas import tpu as pltpu


def _round_up(x, m):
    return ((x + m - 1) // m) * m


# -----------------------------------------------------------------------------
# Kernel: one batch tile.
#   y   = xn @ Wn + x1 @ W1 + x2 @ W2 + b     (three MXU dots over K-chunks,
#                                              shared N, f32 accumulation)
#   out = tanh(y[:, :H]) * sigmoid(y[:, H:2H])
# Fused weight column layout: [merge | merge_g] packed contiguously, padded
# jointly to a multiple of 128 lanes.
# -----------------------------------------------------------------------------
def merge_kernel(xn_ref, x1_ref, x2_ref, wn_ref, w1_ref, w2_ref, b_ref, o_ref):
    h = o_ref.shape[-1]
    dt = wn_ref.dtype                                    # matmul operand dtype
    y = jnp.dot(xn_ref[...].astype(dt), wn_ref[...],
                preferred_element_type=jnp.float32)
    y = y + jnp.dot(x1_ref[...].astype(dt), w1_ref[...],
                    preferred_element_type=jnp.float32)
    y = y + jnp.dot(x2_ref[...].astype(dt), w2_ref[...],
                    preferred_element_type=jnp.float32)
    y = y + b_ref[...]                                   # f32 bias (VPU)
    sub_tree = jnp.tanh(y[:, :h])                        # merge branch   (EUP)
    gate = jax.nn.sigmoid(y[:, h:2 * h])                 # merge_g branch (EUP)
    o_ref[...] = (sub_tree * gate).astype(o_ref.dtype)


# -----------------------------------------------------------------------------
# One-time parameter prep (call once, cache the result, reuse every forward).
# -----------------------------------------------------------------------------
def prepare_merge_params(params, *, matmul_dtype=jnp.bfloat16):
    Wm, bm = params["merge"]          # (H, K) PyTorch-Linear layout, (H,)
    Wg, bg = params["merge_g"]
    Wm = jnp.asarray(Wm, jnp.float32)
    Wg = jnp.asarray(Wg, jnp.float32)
    H, K = Wm.shape
    E = K - 2 * H
    Np = _round_up(2 * H, 128)        # joint [merge | merge_g] lane padding

    w = jnp.zeros((K, Np), jnp.float32)
    w = w.at[:, :H].set(Wm.T)
    w = w.at[:, H:2 * H].set(Wg.T)
    b = jnp.zeros((1, Np), jnp.float32)
    b = b.at[0, :H].set(jnp.asarray(bm, jnp.float32))
    b = b.at[0, H:2 * H].set(jnp.asarray(bg, jnp.float32))

    w = w.astype(matmul_dtype)
    return {
        "H": H,
        "E": E,
        "w_node": w[:E],              # (E, Np) rows for node_embedding
        "w_s1": w[E:E + H],           # (H, Np) rows for sub_tree_1
        "w_s2": w[E + H:],            # (H, Np) rows for sub_tree_2
        "b": b,                       # (1, Np) f32
    }


# -----------------------------------------------------------------------------
# Forward pass (dropout == identity, eval mode).
#   node_embedding: (B, E), sub_tree_1/2: (B, H)  ->  (B, H)
# -----------------------------------------------------------------------------
def merge_forward(prepped, node_embedding, sub_tree_1, sub_tree_2,
                  *, block_b=256, vmem_limit_bytes=48 * 1024 * 1024,
                  core_parallel=False):
    H, E = prepped["H"], prepped["E"]
    wn, w1, w2, b = (prepped["w_node"], prepped["w_s1"],
                     prepped["w_s2"], prepped["b"])
    Np = b.shape[-1]
    B = node_embedding.shape[0]

    TB = min(block_b, _round_up(B, 8))        # batch tile, multiple of 8
    grid = (pl.cdiv(B, TB),)

    # Only CORE_PARALLEL actually shards a grid axis across v7x's 2 TCs;
    # gate it on having >= 2 batch tiles so grid=1 callers stay on the
    # generation-agnostic path.
    batch_sem = (pltpu.CORE_PARALLEL if (core_parallel and grid[0] >= 2)
                 else "parallel")

    def act_spec(width):
        return pl.BlockSpec((TB, width), lambda i: (i, 0))

    def resident_spec(shape):
        # Grid-invariant operand: single-buffered (no wasted 2nd VMEM buffer).
        return pl.BlockSpec(shape, lambda i: (0, 0),
                            pipeline_mode=pl.Buffered(1))

    return pl.pallas_call(
        merge_kernel,
        out_shape=jax.ShapeDtypeStruct((B, H), node_embedding.dtype),
        grid_spec=pltpu.PrefetchScalarGridSpec(
            num_scalar_prefetch=0,
            grid=grid,
            in_specs=[
                act_spec(E),                  # node_embedding
                act_spec(H),                  # sub_tree_1
                act_spec(H),                  # sub_tree_2
                resident_spec((E, Np)),       # fused weight rows: node
                resident_spec((H, Np)),       # fused weight rows: sub_tree_1
                resident_spec((H, Np)),       # fused weight rows: sub_tree_2
                resident_spec((1, Np)),       # fused bias
            ],
            out_specs=pl.BlockSpec((TB, H), lambda i: (i, 0)),
        ),
        compiler_params=pltpu.CompilerParams(
            dimension_semantics=(batch_sem,),
            vmem_limit_bytes=vmem_limit_bytes,
        ),
    )(node_embedding, sub_tree_1, sub_tree_2, wn, w1, w2, b)


# -----------------------------------------------------------------------------
# Parameters (deterministic, PyTorch-Linear-style uniform init)
# -----------------------------------------------------------------------------
def make_params(key, hidden_size, embedding_size):
    H, E = hidden_size, embedding_size
    K = 2 * H + E

    def linear(k, out_f, in_f):
        k1, k2 = jax.random.split(k)
        bound = 1.0 / np.sqrt(in_f)
        W = jax.random.uniform(k1, (out_f, in_f), jnp.float32, -bound, bound)
        b = jax.random.uniform(k2, (out_f,), jnp.float32, -bound, bound)
        return W, b

    k1, k2 = jax.random.split(key)
    return {"merge": linear(k1, H, K), "merge_g": linear(k2, H, K)}


# -----------------------------------------------------------------------------
# Host-side float64 reference (mirrors the PyTorch forward, eval mode)
# -----------------------------------------------------------------------------
def reference_forward(params, node_embedding, sub_tree_1, sub_tree_2):
    Wm, bm = params["merge"]
    Wg, bg = params["merge_g"]
    Wm = np.asarray(Wm, np.float64)
    bm = np.asarray(bm, np.float64)
    Wg = np.asarray(Wg, np.float64)
    bg = np.asarray(bg, np.float64)
    x = np.concatenate(
        [np.asarray(node_embedding, np.float64),
         np.asarray(sub_tree_1, np.float64),
         np.asarray(sub_tree_2, np.float64)], axis=1)
    sub_tree = np.tanh(x @ Wm.T + bm)
    gate = 1.0 / (1.0 + np.exp(-(x @ Wg.T + bg)))
    return sub_tree * gate


# -----------------------------------------------------------------------------
if __name__ == "__main__":
    B, H, E = 2, 32, 24          # batch, hidden_size, embedding_size

    key = jax.random.PRNGKey(0)
    k_params, k_node, k_s1, k_s2 = jax.random.split(key, 4)

    params = make_params(k_params, H, E)
    node_embedding = jax.random.normal(k_node, (B, E), jnp.float32)
    sub_tree_1 = jax.random.normal(k_s1, (B, H), jnp.float32)
    sub_tree_2 = jax.random.normal(k_s2, (B, H), jnp.float32)

    ref = reference_forward(params, node_embedding, sub_tree_1, sub_tree_2)

    # Default path: cached bf16 fused weights (one-time prep), f32 accumulation.
    prepped_bf16 = prepare_merge_params(params)           # cache & reuse
    out_bf16 = jax.block_until_ready(
        merge_forward(prepped_bf16, node_embedding, sub_tree_1, sub_tree_2))
    np.testing.assert_allclose(np.asarray(out_bf16, np.float64), ref,
                               rtol=6e-2, atol=6e-2,
                               err_msg="mismatch in Merge output (bf16 path)")

    # f32-operand path (strict-accuracy / training-parity fallback).
    prepped_f32 = prepare_merge_params(params, matmul_dtype=jnp.float32)
    out_f32 = jax.block_until_ready(
        merge_forward(prepped_f32, node_embedding, sub_tree_1, sub_tree_2))
    np.testing.assert_allclose(np.asarray(out_f32, np.float64), ref,
                               rtol=2e-4, atol=2e-4,
                               err_msg="mismatch in Merge output (f32 path)")

    print("KERNEL_OK")
</pallas_src>

<mosaic_0001>
module attributes {stable_mosaic.version = 11 : i64} {
  func.func @merge_kernel(%arg0: i32, %arg1: memref<8x24xf32, #tpu.memory_space<vmem>>, %arg2: memref<8x32xf32, #tpu.memory_space<vmem>>, %arg3: memref<8x32xf32, #tpu.memory_space<vmem>>, %arg4: memref<24x128xbf16, #tpu.memory_space<vmem>>, %arg5: memref<32x128xbf16, #tpu.memory_space<vmem>>, %arg6: memref<32x128xbf16, #tpu.memory_space<vmem>>, %arg7: memref<1x128xf32, #tpu.memory_space<vmem>>, %arg8: memref<8x32xf32, #tpu.memory_space<vmem>>) attributes {dimension_semantics = [#tpu.dimension_semantics<parallel>], iteration_bounds = array<i64: 1>, scalar_prefetch = 0 : i64, scratch_operands = 0 : i64, tpu.core_type = #tpu.core_type<tc>, window_params = [{transform_indices = @transform_0, window_bounds = array<i64: 8, 24>}, {transform_indices = @transform_1, window_bounds = array<i64: 8, 32>}, {transform_indices = @transform_2, window_bounds = array<i64: 8, 32>}, {pipeline_mode = #tpu.pipeline_mode<synchronous>, transform_indices = @transform_3, window_bounds = array<i64: 24, 128>}, {pipeline_mode = #tpu.pipeline_mode<synchronous>, transform_indices = @transform_4, window_bounds = array<i64: 32, 128>}, {pipeline_mode = #tpu.pipeline_mode<synchronous>, transform_indices = @transform_5, window_bounds = array<i64: 32, 128>}, {pipeline_mode = #tpu.pipeline_mode<synchronous>, transform_indices = @transform_6, window_bounds = array<i64: 1, 128>}, {transform_indices = @transform_7, window_bounds = array<i64: 8, 32>}]} {
    %c0 = arith.constant 0 : index
    %c0_0 = arith.constant 0 : index
    %0 = vector.load %arg1[%c0, %c0_0] : memref<8x24xf32, #tpu.memory_space<vmem>>, vector<8x24xf32>
    %1 = arith.truncf %0 : vector<8x24xf32> to vector<8x24xbf16>
    %c0_1 = arith.constant 0 : index
    %c0_2 = arith.constant 0 : index
    %2 = vector.load %arg4[%c0_1, %c0_2] : memref<24x128xbf16, #tpu.memory_space<vmem>>, vector<24x128xbf16>
    %cst = arith.constant dense<0.000000e+00> : vector<8x128xf32>
    %3 = tpu.matmul %1, %2, %cst {dimension_numbers = #tpu.dot_dimension_numbers<[1], [0], [0], [1], [0, 0, 1, 1], [], []>} : vector<8x24xbf16>, vector<24x128xbf16>, vector<8x128xf32> -> vector<8x128xf32>
    %c0_3 = arith.constant 0 : index
    %c0_4 = arith.constant 0 : index
    %4 = vector.load %arg2[%c0_3, %c0_4] : memref<8x32xf32, #tpu.memory_space<vmem>>, vector<8x32xf32>
    %5 = arith.truncf %4 : vector<8x32xf32> to vector<8x32xbf16>
    %c0_5 = arith.constant 0 : index
    %c0_6 = arith.constant 0 : index
    %6 = vector.load %arg5[%c0_5, %c0_6] : memref<32x128xbf16, #tpu.memory_space<vmem>>, vector<32x128xbf16>
    %cst_7 = arith.constant dense<0.000000e+00> : vector<8x128xf32>
    %7 = tpu.matmul %5, %6, %cst_7 {dimension_numbers = #tpu.dot_dimension_numbers<[1], [0], [0], [1], [0, 0, 1, 1], [], []>} : vector<8x32xbf16>, vector<32x128xbf16>, vector<8x128xf32> -> vector<8x128xf32>
    %8 = arith.addf %3, %7 : vector<8x128xf32>
    %c0_8 = arith.constant 0 : index
    %c0_9 = arith.constant 0 : index
    %9 = vector.load %arg3[%c0_8, %c0_9] : memref<8x32xf32, #tpu.memory_space<vmem>>, vector<8x32xf32>
    %10 = arith.truncf %9 : vector<8x32xf32> to vector<8x32xbf16>
    %c0_10 = arith.constant 0 : index
    %c0_11 = arith.constant 0 : index
    %11 = vector.load %arg6[%c0_10, %c0_11] : memref<32x128xbf16, #tpu.memory_space<vmem>>, vector<32x128xbf16>
    %cst_12 = arith.constant dense<0.000000e+00> : vector<8x128xf32>
    %12 = tpu.matmul %10, %11, %cst_12 {dimension_numbers = #tpu.dot_dimension_numbers<[1], [0], [0], [1], [0, 0, 1, 1], [], []>} : vector<8x32xbf16>, vector<32x128xbf16>, vector<8x128xf32> -> vector<8x128xf32>
    %13 = arith.addf %8, %12 : vector<8x128xf32>
    %c0_13 = arith.constant 0 : index
    %c0_14 = arith.constant 0 : index
    %14 = vector.load %arg7[%c0_13, %c0_14] : memref<1x128xf32, #tpu.memory_space<vmem>>, vector<1x128xf32>
    %15 = vector.broadcast %14 : vector<1x128xf32> to vector<8x128xf32>
    %16 = arith.addf %13, %15 : vector<8x128xf32>
    %17 = vector.extract_strided_slice %16 {offsets = [0, 0], sizes = [8, 32], strides = [1, 1]} : vector<8x128xf32> to vector<8x32xf32>
    %18 = math.tanh %17 : vector<8x32xf32>
    %19 = vector.extract_strided_slice %16 {offsets = [0, 32], sizes = [8, 32], strides = [1, 1]} : vector<8x128xf32> to vector<8x32xf32>
    %20 = arith.negf %19 : vector<8x32xf32>
    %21 = math.exp %20 : vector<8x32xf32>
    %cst_15 = arith.constant 1.000000e+00 : f32
    %22 = vector.broadcast %cst_15 : f32 to vector<8x32xf32>
    %23 = arith.addf %22, %21 : vector<8x32xf32>
    %24 = arith.divf %22, %23 : vector<8x32xf32>
    %25 = arith.mulf %18, %24 : vector<8x32xf32>
    %c0_16 = arith.constant 0 : index
    %c0_17 = arith.constant 0 : index
    %26 = vector.load %arg8[%c0_16, %c0_17] : memref<8x32xf32, #tpu.memory_space<vmem>>, vector<8x32xf32>
    tpu.vector_store %arg8[%c0_16, %c0_17], %25 {strides = array<i32>} : memref<8x32xf32, #tpu.memory_space<vmem>>, vector<8x32xf32>,
    return
  }
  func.func @transform_0(%arg0: i32) -> (i32, i32) {
    %c0_i32 = arith.constant 0 : i32
    %c0_i32_0 = arith.constant 0 : i32
    return %arg0, %c0_i32 : i32, i32
  }
  func.func @transform_1(%arg0: i32) -> (i32, i32) {
    %c0_i32 = arith.constant 0 : i32
    %c0_i32_0 = arith.constant 0 : i32
    return %arg0, %c0_i32 : i32, i32
  }
  func.func @transform_2(%arg0: i32) -> (i32, i32) {
    %c0_i32 = arith.constant 0 : i32
    %c0_i32_0 = arith.constant 0 : i32
    return %arg0, %c0_i32 : i32, i32
  }
  func.func @transform_3(%arg0: i32) -> (i32, i32) {
    %c0_i32 = arith.constant 0 : i32
    %c0_i32_0 = arith.constant 0 : i32
    %c0_i32_1 = arith.constant 0 : i32
    return %c0_i32, %c0_i32_0 : i32, i32
  }
  func.func @transform_4(%arg0: i32) -> (i32, i32) {
    %c0_i32 = arith.constant 0 : i32
    %c0_i32_0 = arith.constant 0 : i32
    %c0_i32_1 = arith.constant 0 : i32
    return %c0_i32, %c0_i32_0 : i32, i32
  }
  func.func @transform_5(%arg0: i32) -> (i32, i32) {
    %c0_i32 = arith.constant 0 : i32
    %c0_i32_0 = arith.constant 0 : i32
    %c0_i32_1 = arith.constant 0 : i32
    return %c0_i32, %c0_i32_0 : i32, i32
  }
  func.func @transform_6(%arg0: i32) -> (i32, i32) {
    %c0_i32 = arith.constant 0 : i32
    %c0_i32_0 = arith.constant 0 : i32
    %c0_i32_1 = arith.constant 0 : i32
    return %c0_i32, %c0_i32_0 : i32, i32
  }
  func.func @transform_7(%arg0: i32) -> (i32, i32) {
    %c0_i32 = arith.constant 0 : i32
    %c0_i32_0 = arith.constant 0 : i32
    return %arg0, %c0_i32 : i32, i32
  }
}

</mosaic_0001>

<bundles_post_ra>
// kernel: tpu_custom_call.1
= control target key start
LH: loop header
LB: loop body
LE: loop exit
PB: predicated region body
PF: predicated region fallthrough
CT: control target
= control target key end

     0   :  { %12 = vsyncpa [#allocation3], 0  ;;  %s597_s0 = inlined_call_operand.hbm [shape: f32[2,24], index: 0, kind: input, shape index: {}]   ;;  %s598_s1 = inlined_call_operand.hbm [shape: f32[2,32], index: 1, kind: input, shape index: {}]   ;;  %s599_s2 = inlined_call_operand.hbm [shape: f32[2,32], index: 2, kind: input, shape index: {}]   ;;  %s600_s3 = inlined_call_operand.hbm [shape: bf16[24,128], index: 3, kind: input, shape index: {}]   ;;  %s601_s4 = inlined_call_operand.hbm [shape: bf16[32,128], index: 4, kind: input, shape index: {}]   ;;  %s602_s5 = inlined_call_operand.hbm [shape: bf16[32,128], index: 5, kind: input, shape index: {}]   ;;  %s603_s6 = inlined_call_operand.vmem [shape: f32[1,128], index: 6, kind: input, shape index: {}]   ;;  %s604_s7 = inlined_call_operand.hbm [shape: f32[2,32], index: 7, kind: output, shape index: {}]  }
   0x1   :  { %13 = vsyncpa [#allocation6], 0 }
   0x2   :  { %14 = vsyncpa [#allocation9], 0 }
   0x3   :  { %15 = vsyncpa [#allocation12], 0 }
   0x4   :  { %16 = vsyncpa [#allocation4], 0 }
   0x5   :  { %20 = vsyncadd [#allocation3], 96  ;;  %s21_s26 = sshll.u32 %s597_s0, 4  ;;  %s506_s27 = smov [#allocation2]   ;;  %s22_s26 = int_to_ptr.hbm [resolvable:$true] %s21_s26 }
   0x6   :  { %s23_s28 = sshll.u32 %s506_s27, 4  ;;  %s507_s29 = smov 32   ;;  %s24_s28 = int_to_ptr.vmem [resolvable:$true] %s23_s28 }
   0x7   :  { %s508_s30 = smov 2  }
   0x8   :  { %29 = dma.hbm_to_vmem [thread:$0]  %s22_s26, 32, %s24_s28, [#allocation3], %s507_s29, %s507_s29, %s508_s30  }
   0x9   :  { %33 = vsyncadd [#allocation6], 96  ;;  %s34_s10 = sshll.u32 %s598_s1, 4  ;;  %s509_s11 = smov [#allocation5]   ;;  %s35_s10 = int_to_ptr.hbm [resolvable:$true] %s34_s10 }
   0xa   :  { %s36_s12 = sshll.u32 %s509_s11, 4  ;;  %s60_s14 = sshll.u32 %s600_s3, 4  ;;  %s37_s12 = int_to_ptr.vmem [resolvable:$true] %s36_s12  ;;  %s61_s14 = int_to_ptr.hbm [resolvable:$true] %s60_s14 }
   0xb   :  { %42 = dma.hbm_to_vmem [thread:$0]  %s35_s10, 32, %s37_s12, [#allocation6], %s507_s29, %s507_s29, %s508_s30  }
   0xc   :  { %46 = vsyncadd [#allocation6], 96  ;;  %s510_s15 = smov [#allocation8]   ;;  %s47_s1 = sshll.u32 %s599_s2, 4  ;;  %s48_s1 = int_to_ptr.hbm [resolvable:$true] %s47_s1 }
   0xd   :  { %s62_s16 = sshll.u32 %s510_s15, 4  ;;  %s511_s19 = smov 64   ;;  %s63_s16 = int_to_ptr.vmem [resolvable:$true] %s62_s16 }
   0xe   :  { %s512_s20 = smov 4   ;;  %s513_s21 = smov [#allocation7]  }
   0xf   :  { %68 = dma.hbm_to_vmem [thread:$0]  %s61_s14, 192, %s63_s16, [#allocation9], %s511_s19, %s511_s19, %s512_s20  }
  0x10   :  { %s49_s22 = sshll.u32 %s513_s21, 4  ;;  %s73_s25 = sshll.u32 %s601_s4, 4  ;;  %s50_s22 = int_to_ptr.vmem [resolvable:$true] %s49_s22  ;;  %s74_s25 = int_to_ptr.hbm [resolvable:$true] %s73_s25 }
  0x11   :  { %55 = dma.hbm_to_vmem [thread:$0]  %s48_s1, 32, %s50_s22, [#allocation6], %s507_s29, %s507_s29, %s508_s30  }
  0x12   :  { %s86_s2 = sshll.u32 %s602_s5, 4  ;;  %s514_s27 = smov [#allocation10]   ;;  %s87_s2 = int_to_ptr.hbm [resolvable:$true] %s86_s2 }
  0x13   :  { %s75_s28 = sshll.u32 %s514_s27, 4  ;;  %s515_s8 = smov [#allocation11]   ;;  %s76_s28 = int_to_ptr.vmem [resolvable:$true] %s75_s28 }
  0x14   :  { %81 = dma.hbm_to_vmem [thread:$0]  %s74_s25, 256, %s76_s28, [#allocation9], %s511_s19, %s511_s19, %s512_s20  }
  0x15   :  { %s88_s9 = sshll.u32 %s515_s8, 4  ;;  %s89_s9 = int_to_ptr.vmem [resolvable:$true] %s88_s9 }
  0x16   :  { %94 = dma.hbm_to_vmem [thread:$0]  %s87_s2, 256, %s89_s9, [#allocation12], %s511_s19, %s511_s19, %s512_s20  }
  0x17   :  { %496 = dma.done.wait [#allocation3], 128  }
  0x18   :  { %497 = vsyncadd [#allocation3], 4294967168 }
  0x19   :  { %498 = dma.done.wait [#allocation6], 256  }
  0x1a   :  { %499 = vsyncadd [#allocation6], 4294967040 }
  0x1b   :  { %500 = dma.done.wait [#allocation9], 448  }
  0x1c   :  { %501 = vsyncadd [#allocation9], 4294966848 }
  0x1d   :  { %502 = dma.done.wait [#allocation12], 256  }
  0x1e   :  { %503 = vsyncadd [#allocation12], 4294967040  ;;  %v306_v0 = vld [vmem:[#allocation10 + $0x8] sm:$0xff]  ;;  %v308_v1 = vld [vmem:[#allocation11 + $0x8] sm:$0xff]  ;;  %vm175_vm0 = vcmask 1043456   ;;  %vm145_vm1 = vcmask 261120  }
  0x1f   :  { %v126_v2 = vld [vmem:[#allocation8 + $0x8] sm:$0xf]  ;;  %155 = vmatpush.bf16.msra.mxu0 %v306_v0  ;;  %219 = vmatpush.bf16.msra.mxu2 %v308_v1  ;;  %v305_v4 = vld [vmem:[#allocation10] sm:$0xff]  ;;  %v307_v7 = vld [vmem:[#allocation11] sm:$0xff]  ;;  %vm171_vm2 = vcmask 195584  }
  0x20   :  { %v167_v3 = vunpack.c.l.b16 %v126_v2  ;;  %v127_v5 = vld [vmem:[#allocation5] sm:$0xff]  ;;  %v192_v8 = vld [vmem:[#allocation7] sm:$0xff]  ;;  %v304_v11 = vld [vmem:[#allocation8] sm:$0xff] }
  0x21   :  { %v128_v10 = vpack.c.bf16 %v127_v5, %v127_v5  ;;  %v193_v12 = vpack.c.bf16 %v192_v8, %v192_v8  ;;  %v122_v13 = vld [vmem:[#allocation2] sm:$0xff] }
  0x22   :  { %v169_v6 = vpack.c.b16 %v167_v3, %v167_v3  ;;  %v123_v14 = vpack.c.bf16 %v122_v13, %v122_v13  ;;  %v321_v18 = vld [vmem:[%s603_s6] ss:$0 sm:$0xff]  ;;  %s516_s6 = smov 96  }
  0x23   :  { %156 = vmatpush.bf16.msra.mxu0 %v305_v4  ;;  %220 = vmatpush.bf16.msra.mxu2 %v307_v7 }
  0x24   :  { %v177_v9 = vsel %vm175_vm0, %v169_v6, 0 }
  0x25   :  { %185 = vmatpush.bf16.msra.mxu1 %v177_v9 }
  0x26   :  { %288 = vmatmul.msk.bf16.vlgmr.msra.gmra.mxu0 %vm145_vm1, %v128_v10  ;;  %302 = vmatmul.msk.bf16.vlgmr.msra.gmra.mxu2 %vm145_vm1, %v193_v12 }
  0x29   :  { %186 = vmatpush.bf16.msra.mxu1 %v304_v11 }
  0x2c   :  { %293 = vmatmul.msk.bf16.vlgmr.msra.gmra.mxu1 %vm171_vm2, %v123_v14 }
  0xa3   :  { %v158_v15 = vpop.f32.mrf.mxu0 }
  0xa9   :  { %v188_v16 = vpop.f32.mrf.mxu1  ;;  %v222_v19 = vpop.f32.mrf.mxu2 }
  0xaa   :  { %v189_v17 = vadd.f32 %v188_v16, %v158_v15 }
  0xab   :  { %v160_v21 = vpop.f32.mrf.mxu0 }
  0xac   :  { %v226_v20 = vadd.f32 %v222_v19, %v189_v17 }
  0xae   :  { %v231_v22 = vadd.f32 %v321_v18, %v226_v20 }
  0xb0   :  { %v303_v23 = vmul.f32 -1.442695, %v231_v22 }
  0xb1   :  { %v190_v24 = vpop.f32.mrf.mxu1  ;;  %v224_v25 = vpop.f32.mrf.mxu2 }
  0xb2   :  { %322 = vpow2.f32 %v303_v23 }
  0xb8   :  { %v323_v26 = vpop.eup %322 }
  0xb9   :  { %v236_v27 = vadd.f32 1.0, %v323_v26 }
  0xbb   :  { %324 = vrcp.f32 %v236_v27  ;;  %v248_v31 = vand.u32 2147483648, %v236_v27  ;;  %v246_v33 = vand.u32 2147483647, %v236_v27  ;;  %vm242_vm4 = vweird.f32 %v236_v27 }
  0xbc   :  { %326 = vtanh.f32 %v231_v22 }
  0xbd   :  { %v249_v35 = vor.u32 1.1754944e-38, %v248_v31  ;;  %vm247_vm6 = vcmp.eq.f32.partialorder %v246_v33, 8.507059e+37 }
  0xc1   :  { %v325_v28 = vpop.eup %324 }
  0xc2   :  { %v238_v29 = vmul.f32 %v325_v28, %v236_v27  ;;  %vm243_vm3 = vweird.f32 %v325_v28  ;;  %v327_v38 = vpop.eup %326 }
  0xc3   :  { %vm244_vm5 = vmor %vm242_vm4, %vm243_vm3 }
  0xc4   :  { %v239_v30 = vsub.f32 1.0, %v238_v29 }
  0xc6   :  { %v240_v32 = vmul.f32 %v325_v28, %v239_v30 }
  0xc8   :  { %v241_v34 = vadd.f32 %v325_v28, %v240_v32 }
  0xca   :  { %v245_v36 = vsel %vm244_vm5, %v325_v28, %v241_v34 }
  0xcb   :  { %v250_v37 = vsel %vm247_vm6, %v249_v35, %v245_v36 }
  0xcc   :  { %253 = vrot.lane.b32.xlu0 %v250_v37, %s516_s6 }
 0x13e   :  { %v254_v39 = vpop.permute.xlu0 %253 }
 0x13f   :  { %v256_v40 = vmul.f32 %v327_v38, %v254_v39 }
 0x141   :  { %257 = vst.msk [vmem:[#allocation13] sm:$0xff] %vm145_vm1, %v256_v40 }
 0x142   :  { %261 = vsyncadd [#allocation4], 96  ;;  %s264_s12 = sshll.u32 %s604_s7, 4  ;;  %s517_s0 = smov [#allocation13]   ;;  %s265_s12 = int_to_ptr.hbm [resolvable:$true] %s264_s12 }
 0x143   :  { %s262_s13 = sshll.u32 %s517_s0, 4  ;;  %s263_s13 = int_to_ptr.vmem [resolvable:$true] %s262_s13 }
 0x144   :  { %270 = dma.vmem_to_hbm [thread:$0]  %s263_s13, 32, %s265_s12, [#allocation4], %s507_s29, %s507_s29, %s508_s30  }
 0x145   :  { %504 = dma.done.wait [#allocation4], 128  }
 0x146   :  { %505 = vsyncadd [#allocation4], 4294967168 }
 0x147   :  { %275 = vsyncpa [#allocation3], 1 }
 0x148   :  { %276 = vsyncpa [#allocation6], 1 }
 0x149   :  { %277 = vsyncpa [#allocation9], 1 }
 0x14a   :  { %278 = vsyncpa [#allocation12], 1 }
 0x14b   :  { %279 = vsyncpa [#allocation4], 1 }

</bundles_post_ra>
